<compile_context>
chip_gen: v7x
topology: tpu7x:2x2x1
jax: 0.10.0
libtpu: 0.0.40
codegen_flags: <defaults>
</compile_context>

<pallas_src>
import jax
import jax.numpy as jnp
from jax.experimental import pallas as pl
from jax.experimental.pallas import tpu as pltpu

HEIGHT = 768
NN_SIZE_L1 = 128
NN_SIZE_L2 = 32
NN_SIZE_L3 = 32
NN_SIZE_L4 = 2
Q = 127 / 64

# Batch-tile cap.  Double-buffered inputs at tile=2048:
#   int8 ~6.3 MiB, bf16 ~12.6 MiB, f32 ~25 MiB  -> all fit v7x's 64 MiB VMEM
# (v5e/v6e have 128 MiB and could go larger; 2048 keeps one constant safe
#  across generations).
MAX_BATCH_TILE = 2048
# Multiple-of-32 tiles keep int8 (32,128) / bf16 (16,128) sublane packing
# aligned for every block offset.
MIN_BATCH_TILE = 32


def _round_up(x, m):
    return (x + m - 1) // m * m


def _choose_tile(B):
    """Batch tile: multiple of 32, >=2 grid steps when possible, VMEM-capped."""
    if B <= MIN_BATCH_TILE:
        return B  # single block equal to the full array extent (always legal)
    return min(MAX_BATCH_TILE, _round_up(pl.cdiv(B, 2), MIN_BATCH_TILE))


def net_kernel(x1_ref, x2_ref,
               w1_ref, b1_ref,
               w2a_ref, w2b_ref, b2_ref,
               w3_ref, b3_ref,
               w4_ref, b4_ref,
               o_ref):
    cdt = w1_ref.dtype  # bf16 compute dtype

    # In-kernel cast of the streamed features (int8/f32 -> bf16).  NNUE
    # features are 0/1 so the cast is exact; it rides the VPU while the next
    # tile's DMA is in flight (no separate XLA convert pass over HBM).
    x1 = x1_ref[...].astype(cdt)
    x2 = x2_ref[...].astype(cdt)

    # fc1 on both input halves (shared weights); f32 MXU accumulation.
    h1a = jnp.dot(x1, w1_ref[...], preferred_element_type=jnp.float32) + b1_ref[...]
    h1b = jnp.dot(x2, w1_ref[...], preferred_element_type=jnp.float32) + b1_ref[...]
    # Clipping each half == clipping the concatenated tensor.  Re-cast to bf16
    # so fc2 is a single-pass bf16 MXU dot (values are in [0, 1.98]).
    h1a = jnp.clip(h1a, 0.0, Q).astype(cdt)
    h1b = jnp.clip(h1b, 0.0, Q).astype(cdt)

    # fc2 with the [256,32] weight split into two [128,32] halves:
    # no cross-lane concatenate, two bf16 MXU matmuls accumulated in f32.
    h2 = (jnp.dot(h1a, w2a_ref[...], preferred_element_type=jnp.float32)
          + jnp.dot(h1b, w2b_ref[...], preferred_element_type=jnp.float32)
          + b2_ref[...])
    h2 = jnp.clip(h2, 0.0, Q).astype(cdt)

    # fc3
    h3 = jnp.dot(h2, w3_ref[...], preferred_element_type=jnp.float32) + b3_ref[...]
    h3 = jnp.clip(h3, 0.0, Q).astype(cdt)

    # fc4, symmetric clamp; single (tile, 2) store.
    o = jnp.dot(h3, w4_ref[...], preferred_element_type=jnp.float32) + b4_ref[...]
    o_ref[...] = jnp.clip(o, -Q, Q)


def prepare_params(params, compute_dtype=jnp.bfloat16):
    """One-time prep (hoisted out of the per-call path).

    params: PyTorch-convention dict  w_i [out, in], b_i [out]  (float32).
    Returns kernel-layout dict: weights transposed to [in, out], fc2 split in
    two K=128 halves, all weights cast to `compute_dtype` (bf16) so every
    matmul is single-pass on the MXU; biases kept f32 (added post-accumulate).
    """
    w2t = params["w2"].T.astype(compute_dtype)              # [256, 32]
    return dict(
        w1=params["w1"].T.astype(compute_dtype),            # [768, 128]
        b1=params["b1"][None, :].astype(jnp.float32),        # [1, 128]
        w2a=w2t[:NN_SIZE_L1],                                # [128, 32]
        w2b=w2t[NN_SIZE_L1:],                                # [128, 32]
        b2=params["b2"][None, :].astype(jnp.float32),
        w3=params["w3"].T.astype(compute_dtype),             # [32, 32]
        b3=params["b3"][None, :].astype(jnp.float32),
        w4=params["w4"].T.astype(compute_dtype),             # [32, 2]
        b4=params["b4"][None, :].astype(jnp.float32),
    )


def net_forward(x1, x2, p):
    """x1, x2: [B, 768] features (int8 recommended; bf16/f32 also accepted).
    p: output of prepare_params.  Returns (cp[B], mt[B]) float32."""
    B = x1.shape[0]

    tile = _choose_tile(B)
    grid_steps = pl.cdiv(B, tile)
    grid = (grid_steps,)

    batch_map = lambda i: (i, 0)     # streamed over the batch axis
    resident = lambda i: (0, 0)      # weights/biases stay put across steps
    # TODO(synk): pipeline_mode=pl.Buffered(1) on the resident weight specs
    # would drop their (tiny) double buffers; skipped as a pure VMEM tidy-up.

    in_specs = [
        pl.BlockSpec((tile, HEIGHT), batch_map),
        pl.BlockSpec((tile, HEIGHT), batch_map),
        pl.BlockSpec((HEIGHT, NN_SIZE_L1), resident),
        pl.BlockSpec((1, NN_SIZE_L1), resident),
        pl.BlockSpec((NN_SIZE_L1, NN_SIZE_L2), resident),
        pl.BlockSpec((NN_SIZE_L1, NN_SIZE_L2), resident),
        pl.BlockSpec((1, NN_SIZE_L2), resident),
        pl.BlockSpec((NN_SIZE_L2, NN_SIZE_L3), resident),
        pl.BlockSpec((1, NN_SIZE_L3), resident),
        pl.BlockSpec((NN_SIZE_L3, NN_SIZE_L4), resident),
        pl.BlockSpec((1, NN_SIZE_L4), resident),
    ]
    out_specs = pl.BlockSpec((tile, NN_SIZE_L4), batch_map)

    # Advisory cost estimate (helps XLA schedule this inside a larger jit).
    rows_worked = grid_steps * tile
    flops_per_row = (2 * (2 * HEIGHT * NN_SIZE_L1)          # fc1 on both halves
                     + 2 * (2 * NN_SIZE_L1 * NN_SIZE_L2)    # fc2 (split)
                     + 2 * NN_SIZE_L2 * NN_SIZE_L3          # fc3
                     + 2 * NN_SIZE_L3 * NN_SIZE_L4)         # fc4
    weight_bytes = sum(int(v.size) * v.dtype.itemsize for v in p.values())
    bytes_accessed = (2 * rows_worked * HEIGHT * x1.dtype.itemsize
                      + weight_bytes
                      + rows_worked * NN_SIZE_L4 * 4)
    cost = pl.CostEstimate(flops=rows_worked * flops_per_row,
                           transcendentals=0,
                           bytes_accessed=bytes_accessed)

    o = pl.pallas_call(
        net_kernel,
        out_shape=jax.ShapeDtypeStruct((B, NN_SIZE_L4), jnp.float32),
        grid_spec=pltpu.PrefetchScalarGridSpec(
            num_scalar_prefetch=0,
            grid=grid,
            in_specs=in_specs,
            out_specs=out_specs,
        ),
        compiler_params=pltpu.CompilerParams(
            dimension_semantics=("parallel",),    # megacore split on v7x
            vmem_limit_bytes=48 << 20,            # fits v7x 64 MiB per TC
        ),
        cost_estimate=cost,
    )(x1, x2,
      p["w1"], p["b1"],
      p["w2a"], p["w2b"], p["b2"],
      p["w3"], p["b3"],
      p["w4"], p["b4"])

    return o[:, 0], o[:, 1]


def init_params(key):
    """Deterministic init mirroring torch.nn.Linear default U[-1/sqrt(fan_in), +...]."""
    def linear(key, fan_in, fan_out):
        kw, kb = jax.random.split(key)
        bound = 1.0 / jnp.sqrt(fan_in)
        w = jax.random.uniform(kw, (fan_out, fan_in), jnp.float32, -bound, bound)
        b = jax.random.uniform(kb, (fan_out,), jnp.float32, -bound, bound)
        return w, b

    k1, k2, k3, k4 = jax.random.split(key, 4)
    w1, b1 = linear(k1, HEIGHT, NN_SIZE_L1)
    w2, b2 = linear(k2, NN_SIZE_L1 * 2, NN_SIZE_L2)
    w3, b3 = linear(k3, NN_SIZE_L2, NN_SIZE_L3)
    w4, b4 = linear(k4, NN_SIZE_L3, NN_SIZE_L4)
    return dict(w1=w1, b1=b1, w2=w2, b2=b2, w3=w3, b3=b3, w4=w4, b4=b4)


def net_ref(x1, x2, p):
    """Pure-JAX f32 reference matching the torch module exactly."""
    x1 = x1.astype(jnp.float32)
    x2 = x2.astype(jnp.float32)
    h1a = x1 @ p["w1"].T + p["b1"]
    h1b = x2 @ p["w1"].T + p["b1"]
    h = jnp.clip(jnp.concatenate([h1a, h1b], axis=1), 0.0, Q)
    h = jnp.clip(h @ p["w2"].T + p["b2"], 0.0, Q)
    h = jnp.clip(h @ p["w3"].T + p["b3"], 0.0, Q)
    o = jnp.clip(h @ p["w4"].T + p["b4"], -Q, Q)
    return o[:, 0], o[:, 1]


if __name__ == "__main__":
    key = jax.random.PRNGKey(0)
    kp, kx1, kx2 = jax.random.split(key, 3)

    params = init_params(kp)
    prepared = prepare_params(params)          # one-time: transpose/split/cast

    fwd = jax.jit(net_forward)

    ok = True
    # B=64: exact tile multiple, 2 grid steps (megacore).
    # B=173: exercises the ragged tail block (no padding pass in the wrapper).
    for B in (64, 173):
        kx1_b, kx2_b = jax.random.fold_in(kx1, B), jax.random.fold_in(kx2, B)
        # NNUE inputs are sparse 0/1 feature vectors; keep them int8 in HBM
        # (4x fewer bytes than f32 on the dominant stream); cast happens
        # inside the kernel.
        x1 = jax.random.bernoulli(kx1_b, 0.05, (B, HEIGHT)).astype(jnp.int8)
        x2 = jax.random.bernoulli(kx2_b, 0.05, (B, HEIGHT)).astype(jnp.int8)

        cp, mt = fwd(x1, x2, prepared)
        jax.block_until_ready((cp, mt))

        cp_ref, mt_ref = net_ref(x1, x2, params)
        assert cp.shape == (B,) and mt.shape == (B,)
        # Tolerance relaxed vs pure-f32: weights and intermediate activations
        # are bf16 (f32 MXU accumulation); activations are Q-clamped so the
        # absolute error stays in the 1e-3..1e-2 range.
        ok &= bool(jnp.allclose(cp, cp_ref, atol=1e-2, rtol=1e-2))
        ok &= bool(jnp.allclose(mt, mt_ref, atol=1e-2, rtol=1e-2))

    assert ok, "kernel output mismatch vs reference"
    print("KERNEL_OK")
</pallas_src>

<mosaic_0001>
module attributes {stable_mosaic.version = 11 : i64} {
  func.func @net_kernel(%arg0: i32, %arg1: memref<32x768xi8, #tpu.memory_space<vmem>>, %arg2: memref<32x768xi8, #tpu.memory_space<vmem>>, %arg3: memref<768x128xbf16, #tpu.memory_space<vmem>>, %arg4: memref<1x128xf32, #tpu.memory_space<vmem>>, %arg5: memref<128x32xbf16, #tpu.memory_space<vmem>>, %arg6: memref<128x32xbf16, #tpu.memory_space<vmem>>, %arg7: memref<1x32xf32, #tpu.memory_space<vmem>>, %arg8: memref<32x32xbf16, #tpu.memory_space<vmem>>, %arg9: memref<1x32xf32, #tpu.memory_space<vmem>>, %arg10: memref<32x2xbf16, #tpu.memory_space<vmem>>, %arg11: memref<1x2xf32, #tpu.memory_space<vmem>>, %arg12: memref<32x2xf32, #tpu.memory_space<vmem>>) attributes {dimension_semantics = [#tpu.dimension_semantics<parallel>], iteration_bounds = array<i64: 2>, scalar_prefetch = 0 : i64, scratch_operands = 0 : i64, tpu.core_type = #tpu.core_type<tc>, window_params = [{transform_indices = @transform_0, window_bounds = array<i64: 32, 768>}, {transform_indices = @transform_1, window_bounds = array<i64: 32, 768>}, {pipeline_mode = #tpu.pipeline_mode<synchronous>, transform_indices = @transform_2, window_bounds = array<i64: 768, 128>}, {pipeline_mode = #tpu.pipeline_mode<synchronous>, transform_indices = @transform_3, window_bounds = array<i64: 1, 128>}, {pipeline_mode = #tpu.pipeline_mode<synchronous>, transform_indices = @transform_4, window_bounds = array<i64: 128, 32>}, {pipeline_mode = #tpu.pipeline_mode<synchronous>, transform_indices = @transform_5, window_bounds = array<i64: 128, 32>}, {pipeline_mode = #tpu.pipeline_mode<synchronous>, transform_indices = @transform_6, window_bounds = array<i64: 1, 32>}, {pipeline_mode = #tpu.pipeline_mode<synchronous>, transform_indices = @transform_7, window_bounds = array<i64: 32, 32>}, {pipeline_mode = #tpu.pipeline_mode<synchronous>, transform_indices = @transform_8, window_bounds = array<i64: 1, 32>}, {pipeline_mode = #tpu.pipeline_mode<synchronous>, transform_indices = @transform_9, window_bounds = array<i64: 32, 2>}, {pipeline_mode = #tpu.pipeline_mode<synchronous>, transform_indices = @transform_10, window_bounds = array<i64: 1, 2>}, {transform_indices = @transform_11, window_bounds = array<i64: 32, 2>}]} {
    %c0 = arith.constant 0 : index
    %c0_0 = arith.constant 0 : index
    %0 = vector.load %arg1[%c0, %c0_0] : memref<32x768xi8, #tpu.memory_space<vmem>>, vector<32x768xi8>
    %1 = arith.sitofp %0 : vector<32x768xi8> to vector<32x768xbf16>
    %c0_1 = arith.constant 0 : index
    %c0_2 = arith.constant 0 : index
    %2 = vector.load %arg2[%c0_1, %c0_2] : memref<32x768xi8, #tpu.memory_space<vmem>>, vector<32x768xi8>
    %3 = arith.sitofp %2 : vector<32x768xi8> to vector<32x768xbf16>
    %c0_3 = arith.constant 0 : index
    %c0_4 = arith.constant 0 : index
    %4 = vector.load %arg3[%c0_3, %c0_4] : memref<768x128xbf16, #tpu.memory_space<vmem>>, vector<768x128xbf16>
    %cst = arith.constant dense<0.000000e+00> : vector<32x128xf32>
    %5 = tpu.matmul %1, %4, %cst {dimension_numbers = #tpu.dot_dimension_numbers<[1], [0], [0], [1], [0, 0, 1, 1], [], []>} : vector<32x768xbf16>, vector<768x128xbf16>, vector<32x128xf32> -> vector<32x128xf32>
    %c0_5 = arith.constant 0 : index
    %c0_6 = arith.constant 0 : index
    %6 = vector.load %arg4[%c0_5, %c0_6] : memref<1x128xf32, #tpu.memory_space<vmem>>, vector<1x128xf32>
    %7 = vector.broadcast %6 : vector<1x128xf32> to vector<32x128xf32>
    %8 = arith.addf %5, %7 : vector<32x128xf32>
    %c0_7 = arith.constant 0 : index
    %c0_8 = arith.constant 0 : index
    %9 = vector.load %arg3[%c0_7, %c0_8] : memref<768x128xbf16, #tpu.memory_space<vmem>>, vector<768x128xbf16>
    %cst_9 = arith.constant dense<0.000000e+00> : vector<32x128xf32>
    %10 = tpu.matmul %3, %9, %cst_9 {dimension_numbers = #tpu.dot_dimension_numbers<[1], [0], [0], [1], [0, 0, 1, 1], [], []>} : vector<32x768xbf16>, vector<768x128xbf16>, vector<32x128xf32> -> vector<32x128xf32>
    %c0_10 = arith.constant 0 : index
    %c0_11 = arith.constant 0 : index
    %11 = vector.load %arg4[%c0_10, %c0_11] : memref<1x128xf32, #tpu.memory_space<vmem>>, vector<1x128xf32>
    %12 = vector.broadcast %11 : vector<1x128xf32> to vector<32x128xf32>
    %13 = arith.addf %10, %12 : vector<32x128xf32>
    %cst_12 = arith.constant 0.000000e+00 : f32
    %cst_13 = arith.constant 1.984375 : f32
    %14 = vector.broadcast %cst_12 : f32 to vector<32x128xf32>
    %15 = arith.maximumf %14, %8 : vector<32x128xf32>
    %16 = vector.broadcast %cst_13 : f32 to vector<32x128xf32>
    %17 = arith.minimumf %16, %15 : vector<32x128xf32>
    %18 = arith.truncf %17 : vector<32x128xf32> to vector<32x128xbf16>
    %cst_14 = arith.constant 0.000000e+00 : f32
    %cst_15 = arith.constant 1.984375 : f32
    %19 = vector.broadcast %cst_14 : f32 to vector<32x128xf32>
    %20 = arith.maximumf %19, %13 : vector<32x128xf32>
    %21 = vector.broadcast %cst_15 : f32 to vector<32x128xf32>
    %22 = arith.minimumf %21, %20 : vector<32x128xf32>
    %23 = arith.truncf %22 : vector<32x128xf32> to vector<32x128xbf16>
    %c0_16 = arith.constant 0 : index
    %c0_17 = arith.constant 0 : index
    %24 = vector.load %arg5[%c0_16, %c0_17] : memref<128x32xbf16, #tpu.memory_space<vmem>>, vector<128x32xbf16>
    %cst_18 = arith.constant dense<0.000000e+00> : vector<32x32xf32>
    %25 = tpu.matmul %18, %24, %cst_18 {dimension_numbers = #tpu.dot_dimension_numbers<[1], [0], [0], [1], [0, 0, 1, 1], [], []>} : vector<32x128xbf16>, vector<128x32xbf16>, vector<32x32xf32> -> vector<32x32xf32>
    %c0_19 = arith.constant 0 : index
    %c0_20 = arith.constant 0 : index
    %26 = vector.load %arg6[%c0_19, %c0_20] : memref<128x32xbf16, #tpu.memory_space<vmem>>, vector<128x32xbf16>
    %cst_21 = arith.constant dense<0.000000e+00> : vector<32x32xf32>
    %27 = tpu.matmul %23, %26, %cst_21 {dimension_numbers = #tpu.dot_dimension_numbers<[1], [0], [0], [1], [0, 0, 1, 1], [], []>} : vector<32x128xbf16>, vector<128x32xbf16>, vector<32x32xf32> -> vector<32x32xf32>
    %28 = arith.addf %25, %27 : vector<32x32xf32>
    %c0_22 = arith.constant 0 : index
    %c0_23 = arith.constant 0 : index
    %29 = vector.load %arg7[%c0_22, %c0_23] : memref<1x32xf32, #tpu.memory_space<vmem>>, vector<1x32xf32>
    %30 = vector.broadcast %29 : vector<1x32xf32> to vector<32x32xf32>
    %31 = arith.addf %28, %30 : vector<32x32xf32>
    %cst_24 = arith.constant 0.000000e+00 : f32
    %cst_25 = arith.constant 1.984375 : f32
    %32 = vector.broadcast %cst_24 : f32 to vector<32x32xf32>
    %33 = arith.maximumf %32, %31 : vector<32x32xf32>
    %34 = vector.broadcast %cst_25 : f32 to vector<32x32xf32>
    %35 = arith.minimumf %34, %33 : vector<32x32xf32>
    %36 = arith.truncf %35 : vector<32x32xf32> to vector<32x32xbf16>
    %c0_26 = arith.constant 0 : index
    %c0_27 = arith.constant 0 : index
    %37 = vector.load %arg8[%c0_26, %c0_27] : memref<32x32xbf16, #tpu.memory_space<vmem>>, vector<32x32xbf16>
    %cst_28 = arith.constant dense<0.000000e+00> : vector<32x32xf32>
    %38 = tpu.matmul %36, %37, %cst_28 {dimension_numbers = #tpu.dot_dimension_numbers<[1], [0], [0], [1], [0, 0, 1, 1], [], []>} : vector<32x32xbf16>, vector<32x32xbf16>, vector<32x32xf32> -> vector<32x32xf32>
    %c0_29 = arith.constant 0 : index
    %c0_30 = arith.constant 0 : index
    %39 = vector.load %arg9[%c0_29, %c0_30] : memref<1x32xf32, #tpu.memory_space<vmem>>, vector<1x32xf32>
    %40 = vector.broadcast %39 : vector<1x32xf32> to vector<32x32xf32>
    %41 = arith.addf %38, %40 : vector<32x32xf32>
    %cst_31 = arith.constant 0.000000e+00 : f32
    %cst_32 = arith.constant 1.984375 : f32
    %42 = vector.broadcast %cst_31 : f32 to vector<32x32xf32>
    %43 = arith.maximumf %42, %41 : vector<32x32xf32>
    %44 = vector.broadcast %cst_32 : f32 to vector<32x32xf32>
    %45 = arith.minimumf %44, %43 : vector<32x32xf32>
    %46 = arith.truncf %45 : vector<32x32xf32> to vector<32x32xbf16>
    %c0_33 = arith.constant 0 : index
    %c0_34 = arith.constant 0 : index
    %47 = vector.load %arg10[%c0_33, %c0_34] : memref<32x2xbf16, #tpu.memory_space<vmem>>, vector<32x2xbf16>
    %cst_35 = arith.constant dense<0.000000e+00> : vector<32x2xf32>
    %48 = tpu.matmul %46, %47, %cst_35 {dimension_numbers = #tpu.dot_dimension_numbers<[1], [0], [0], [1], [0, 0, 1, 1], [], []>} : vector<32x32xbf16>, vector<32x2xbf16>, vector<32x2xf32> -> vector<32x2xf32>
    %c0_36 = arith.constant 0 : index
    %c0_37 = arith.constant 0 : index
    %49 = vector.load %arg11[%c0_36, %c0_37] : memref<1x2xf32, #tpu.memory_space<vmem>>, vector<1x2xf32>
    %50 = vector.broadcast %49 : vector<1x2xf32> to vector<32x2xf32>
    %51 = arith.addf %48, %50 : vector<32x2xf32>
    %cst_38 = arith.constant -1.984375 : f32
    %cst_39 = arith.constant 1.984375 : f32
    %52 = vector.broadcast %cst_38 : f32 to vector<32x2xf32>
    %53 = arith.maximumf %52, %51 : vector<32x2xf32>
    %54 = vector.broadcast %cst_39 : f32 to vector<32x2xf32>
    %55 = arith.minimumf %54, %53 : vector<32x2xf32>
    %c0_40 = arith.constant 0 : index
    %c0_41 = arith.constant 0 : index
    %56 = vector.load %arg12[%c0_40, %c0_41] : memref<32x2xf32, #tpu.memory_space<vmem>>, vector<32x2xf32>
    tpu.vector_store %arg12[%c0_40, %c0_41], %55 {strides = array<i32>} : memref<32x2xf32, #tpu.memory_space<vmem>>, vector<32x2xf32>,
    return
  }
  func.func @transform_0(%arg0: i32) -> (i32, i32) {
    %c0_i32 = arith.constant 0 : i32
    %c0_i32_0 = arith.constant 0 : i32
    return %arg0, %c0_i32 : i32, i32
  }
  func.func @transform_1(%arg0: i32) -> (i32, i32) {
    %c0_i32 = arith.constant 0 : i32
    %c0_i32_0 = arith.constant 0 : i32
    return %arg0, %c0_i32 : i32, i32
  }
  func.func @transform_2(%arg0: i32) -> (i32, i32) {
    %c0_i32 = arith.constant 0 : i32
    %c0_i32_0 = arith.constant 0 : i32
    %c0_i32_1 = arith.constant 0 : i32
    return %c0_i32, %c0_i32_0 : i32, i32
  }
  func.func @transform_3(%arg0: i32) -> (i32, i32) {
    %c0_i32 = arith.constant 0 : i32
    %c0_i32_0 = arith.constant 0 : i32
    %c0_i32_1 = arith.constant 0 : i32
    return %c0_i32, %c0_i32_0 : i32, i32
  }
  func.func @transform_4(%arg0: i32) -> (i32, i32) {
    %c0_i32 = arith.constant 0 : i32
    %c0_i32_0 = arith.constant 0 : i32
    %c0_i32_1 = arith.constant 0 : i32
    return %c0_i32, %c0_i32_0 : i32, i32
  }
  func.func @transform_5(%arg0: i32) -> (i32, i32) {
    %c0_i32 = arith.constant 0 : i32
    %c0_i32_0 = arith.constant 0 : i32
    %c0_i32_1 = arith.constant 0 : i32
    return %c0_i32, %c0_i32_0 : i32, i32
  }
  func.func @transform_6(%arg0: i32) -> (i32, i32) {
    %c0_i32 = arith.constant 0 : i32
    %c0_i32_0 = arith.constant 0 : i32
    %c0_i32_1 = arith.constant 0 : i32
    return %c0_i32, %c0_i32_0 : i32, i32
  }
  func.func @transform_7(%arg0: i32) -> (i32, i32) {
    %c0_i32 = arith.constant 0 : i32
    %c0_i32_0 = arith.constant 0 : i32
    %c0_i32_1 = arith.constant 0 : i32
    return %c0_i32, %c0_i32_0 : i32, i32
  }
  func.func @transform_8(%arg0: i32) -> (i32, i32) {
    %c0_i32 = arith.constant 0 : i32
    %c0_i32_0 = arith.constant 0 : i32
    %c0_i32_1 = arith.constant 0 : i32
    return %c0_i32, %c0_i32_0 : i32, i32
  }
  func.func @transform_9(%arg0: i32) -> (i32, i32) {
    %c0_i32 = arith.constant 0 : i32
    %c0_i32_0 = arith.constant 0 : i32
    %c0_i32_1 = arith.constant 0 : i32
    return %c0_i32, %c0_i32_0 : i32, i32
  }
  func.func @transform_10(%arg0: i32) -> (i32, i32) {
    %c0_i32 = arith.constant 0 : i32
    %c0_i32_0 = arith.constant 0 : i32
    %c0_i32_1 = arith.constant 0 : i32
    return %c0_i32, %c0_i32_0 : i32, i32
  }
  func.func @transform_11(%arg0: i32) -> (i32, i32) {
    %c0_i32 = arith.constant 0 : i32
    %c0_i32_0 = arith.constant 0 : i32
    return %arg0, %c0_i32 : i32, i32
  }
}

</mosaic_0001>

<bundles_post_ra>
// kernel: net_forward.1
= control target key start
LH: loop header
LB: loop body
LE: loop exit
PB: predicated region body
PF: predicated region fallthrough
CT: control target
= control target key end

     0   :  { %s2747_s0 = inlined_call_operand.vmem [shape: s8[64,768], index: 0, kind: input, shape index: {}]   ;;  %s2748_s1 = inlined_call_operand.hbm [shape: s8[64,768], index: 1, kind: input, shape index: {}]   ;;  %s2749_s2 = inlined_call_operand.hbm [shape: bf16[768,128], index: 2, kind: input, shape index: {}]   ;;  %s2750_s3 = inlined_call_operand.vmem [shape: f32[1,128], index: 3, kind: input, shape index: {}]   ;;  %s2751_s4 = inlined_call_operand.vmem [shape: bf16[128,32], index: 4, kind: input, shape index: {}]   ;;  %s2752_s5 = inlined_call_operand.vmem [shape: bf16[128,32], index: 5, kind: input, shape index: {}]   ;;  %s2753_s6 = inlined_call_operand.vmem [shape: f32[1,32], index: 6, kind: input, shape index: {}]   ;;  %s2754_s7 = inlined_call_operand.vmem [shape: bf16[32,32], index: 7, kind: input, shape index: {}]   ;;  %s2755_s8 = inlined_call_operand.vmem [shape: f32[1,32], index: 8, kind: input, shape index: {}]   ;;  %s2756_s9 = inlined_call_operand.vmem [shape: bf16[32,2], index: 9, kind: input, shape index: {}]   ;;  %s2757_s10 = inlined_call_operand.vmem [shape: f32[1,2], index: 10, kind: input, shape index: {}]   ;;  %s2758_s11 = inlined_call_operand.vmem [shape: f32[64,2], index: 11, kind: output, shape index: {}]  }
   0x1   :  { %2764 = sst [smem:[#allocation9_spill]] %s2758_s11 }
   0x2   :  { %16 = vsyncpa [#allocation3], 0 }
   0x3   :  { %18 = vsyncpa [#allocation3 + $0x1], 0 }
   0x4   :  { %19 = vsyncpa [#allocation5], 0  ;;  %s2334_s17 = smov 0   ;;  %s2336_s18 = smov 0  }
   0x5   :  { %s2338_s19 = smov 0   ;;  %s2340_s20 = smov 0  }
   0x6 LB: > { %s2353_s21 = sadd.s32 4294967295, %s2268_s20   ;;  %p71_p0 = scmp.ne.s32.totalorder %s2260_s18, %s2256_s17  ;;  %s2268_s20 = sphi %s2340_s20, %s2775_s20   ;;  %s2264_s19 = sphi %s2338_s19, %s2778_s19   ;;  %s2260_s18 = sphi %s2336_s18, %s2777_s18   ;;  %s2256_s17 = sphi %s2334_s17, %s2776_s17  }
   0x7   : > { %p2759_p1 = scmp.eq.s32.totalorder %s2353_s21, 0  ;;  %p1701_p2 = scmp.ge.s32.totalorder %s2268_s20, 1 }
   0x8   : > { %p297_p3 = scmp.lt.s32.totalorder %s2268_s20, 3  ;;  %s2270_s24 = smov [#allocation4]  }
   0x9   : > { %p2361_p4 = por %p2759_p1, %p71_p0  ;;  %s309_s25 = sshll.u32 %s2270_s24, 4  ;;  %s310_s25 = int_to_ptr.vmem [resolvable:$true] %s309_s25 }
   0xa   : > { %p2365_p5 = pnand %p1701_p2, %p297_p3  ;;  %s2378_s27 = sadd.s32 1, %s2268_s20  }
   0xb   : > { %s2765_s22 = scalar_select %p2361_p4, 1, 0 }
   0xc   : > { %s2766_s23 = scalar_select %p2365_p5, 1, 0 }
   0xd   : > { %p2058_p6 = pneg %p2365_p5  ;;  %2768 = sst [smem:[#allocation8_spill]] %s2378_s27 }
   0xe   : > { %s58_s28 = sadd.s32 1, %s2264_s19  ;;  %s55_s29 = ssub.s32 %s2268_s20, %s2378_s27 }
   0xf   : > { %p2373_p7 = pnand %p2058_p6, %p2759_p1  ;;  %s2172_s13 = scalar_lea.hbm %s2749_s2, 6144 }
  0x10   : > { %p2173_p8 = scmp.ne.s32.totalorder %s2749_s2, %s2172_s13  ;;  %p2179_p12 = scmp.lt.u32.totalorder %s2172_s13, %s2749_s2 }
  0x11   : > { %p2174_p9 = pneg %p2373_p7 }
  0x13   : > { %p2175_p10 = pnand %p2174_p9, %p2173_p8 }
  0x15   : > { %p2176_p11 = pneg %p2175_p10 }
  0x17   : > { %p2181_p13 = pnand %p2179_p12, %p2176_p11 }
  0x19   : > { %2184 = shalt.err (!%p2181_p13)
}
  0x1a   : > { %s2185_s24 = scalar_lea.vmem %s310_s25, 6144  ;;  %p2193_p6 = scmp.lt.s32.totalorder %s310_s25, %s310_s25 }
  0x1b   : > { %p2186_p0 = scmp.ne.s32.totalorder %s310_s25, %s2185_s24  ;;  %p2194_p1 = scmp.lt.s32.totalorder %s2185_s24, %s2185_s24 }
  0x1d   : > { %p2188_p2 = pnand %p2186_p0, %p2174_p9  ;;  %p2195_p4 = por %p2194_p1, %p2193_p6 }
  0x1f   : > { %p2189_p3 = pneg %p2188_p2 }
  0x21   : > { %p2196_p5 = pnand %p2195_p4, %p2189_p3 }
  0x23   : > { %2199 = shalt.err (!%p2196_p5)
}
  0x24   : > { %s2271_s30 = smov 64   ;;  %s2272_s12 = smov 4  }
  0x25   : > { %2061 = dma.hbm_to_vmem [thread:$0]  (!%p2373_p7), %s2749_s2, 6144, %s310_s25, [#allocation5], %s2271_s30, %s2271_s30, %s2272_s12  }
  0x26   : > { %p56_p8 = scmp.eq.s32.totalorder %s55_s29, 0  ;;  %p65_p9 = scmp.ne.s32.totalorder %s2264_s19, %s2260_s18 }
  0x27   : > { %p66_p1 = scmp.eq.s32.totalorder %s2268_s20, 0  ;;  %p2067_p4 = scmp.lt.s32.totalorder %s2268_s20, 2 }
  0x28   : > { %s2404_s15 = scalar_select %p56_p8, %s2264_s19, %s58_s28  }
  0x29   : > { %p67_p5 = por %p66_p1, %p65_p9  ;;  %s355_s16 = sand.u32 1, %s2264_s19  }
  0x2a   : > { %s2048_s17 = smul.u32 48, %s355_s16  ;;  %s2205_s13 = scalar_lea.hbm %s2748_s1, 1536 }
  0x2b   : > { %s2049_s24 = smul.u32 768, %s2268_s20  ;;  %p2408_p10 = pnand %p2067_p4, %p67_p5 }
  0x2c   : > { %s359_s28 = scalar_lea.vmem [#allocation2], %s2048_s17  ;;  %s356_s20 = scalar_lea.sflag [#allocation3], %s355_s16 }
  0x2d   : > { %s2415_s25 = scalar_lea.hbm %s2748_s1, %s2049_s24  ;;  %s367_s29 = sshll.u32 %s359_s28, 4  ;;  %s2417_s29 = int_to_ptr.vmem [resolvable:$true] %s367_s29 }
  0x2e   : > { %s2200_s30 = scalar_lea.hbm %s2415_s25, 768  ;;  %p2202_p11 = pneg %p2408_p10 }
  0x2f   : > { %p2201_p7 = scmp.ne.s32.totalorder %s2415_s25, %s2200_s30  ;;  %p2206_p0 = scmp.lt.u32.totalorder %s2415_s25, %s2748_s1 }
  0x30   : > { %p2207_p2 = scmp.lt.u32.totalorder %s2205_s13, %s2200_s30  ;;  %p2209_p6 = scmp.lt.u32.totalorder %s2200_s30, %s2415_s25 }
  0x31   : > { %p2203_p12 = pnand %p2202_p11, %p2201_p7 }
  0x32   : > { %p2208_p3 = por %p2207_p2, %p2206_p0 }
  0x33   : > { %p2204_p13 = pneg %p2203_p12 }
  0x34   : > { %p2210_p8 = por %p2209_p6, %p2208_p3 }
  0x36   : > { %p2211_p9 = pnand %p2210_p8, %p2204_p13 }
  0x38   : > { %2214 = shalt.err (!%p2211_p9)
}
  0x39   : > { %s2215_s16 = scalar_lea.vmem %s2417_s29, 768  ;;  %s2273_s17 = smov [#allocation2]  }
  0x3a   : > { %p2216_p1 = scmp.ne.s32.totalorder %s2417_s29, %s2215_s16  ;;  %s2220_s26 = sshll.u32 %s2273_s17, 4  ;;  %s2221_s26 = int_to_ptr.vmem [resolvable:$false] %s2220_s26 }
  0x3b   : > { %s2222_s28 = scalar_lea.vmem %s2221_s26, 1536  ;;  %p2223_p7 = scmp.lt.s32.totalorder %s2417_s29, %s2221_s26 }
  0x3c   : > { %p2218_p4 = pnand %p2216_p1, %p2202_p11  ;;  %p2224_p12 = scmp.lt.s32.totalorder %s2222_s28, %s2215_s16 }
  0x3e   : > { %p2219_p5 = pneg %p2218_p4  ;;  %p2225_p0 = por %p2224_p12, %p2223_p7 }
  0x40   : > { %p2226_p2 = pnand %p2225_p0, %p2219_p5 }
  0x42   : > { %2229 = shalt.err (!%p2226_p2)
}
  0x43   : > { %2065 = dma.hbm_to_vmem [thread:$0]  (!%p2408_p10), %s2415_s25, 768, %s2417_s29, %s356_s20  }
  0x44   : > { %p2770_p13 = scmp.ne.s32.totalorder %s2766_s23, 0 }
  0x45   : > { %s378_s30 = sand.u32 (!%p2770_p13), 1, %s2260_s18   ;;  %p2771_p11 = scmp.ne.s32.totalorder (!%p2770_p13), %s2765_s22, 0 }
  0x46   : > { %376 = sbr.rel (%p2770_p13) target bundleno = 1084 (0x43c), region = 64  ;;  %s379_s12 = scalar_lea.sflag (!%p2770_p13), [#allocation3], %s378_s30 }
  0x47   : > { %s2050_s11 = smul.u32 (!%p2770_p13), 48, %s378_s30 }
  0x49   : > { %s2447_s13 = scalar_lea.vmem (!%p2770_p13), [#allocation2], %s2050_s11 }
  0x4d   : > { %2247 = dma.done.wait (%p2771_p11), %s379_s12, 768  }
  0x4e   : > { %2249 = vsyncadd (%p2771_p11), %s379_s12, 4294966528  ;;  %p2772_p3 = scmp.eq.s32.totalorder %s2353_s21, 0 }
  0x50   : > { %2251 = dma.done.wait (%p2772_p3), [#allocation5], 6144   ;;  %p2773_p10 = pmov %p2772_p3 }
  0x51   : > { %v2457_v0 = vld [vmem:[#allocation4 + $0x40] sm:$0xff]   ;;  %v2468_v4 = vld [vmem:[#allocation4 + $0x48] sm:$0xff]   ;;  %v2480_v8 = vld [vmem:[#allocation4 + $0x50] sm:$0xff]   ;;  %p430_p6 = scmp.lt.s32.totalorder %s2353_s21, 1  ;;  %vm1453_vm0 = vcmask 261120   ;;  %s1708_s25 = sshll.u32 %s2353_s21, 2 }
  0x52   : > { %2253 = vsyncadd (%p2773_p10), [#allocation5], 4294961152  ;;  %v2459_v1 = vld [vmem:[#allocation4 + $0xc0] sm:$0xff]   ;;  %1792 = vmatprep.subr.bf16.mxu0 %v2457_v0  ;;  %v2471_v5 = vld [vmem:[#allocation4 + $0xc8] sm:$0xff]   ;;  %p436_p8 = scmp.lt.s32.totalorder %s1708_s25, 7  ;;  %s2774_s17 = sld [smem:[#allocation9_spill]] }
  0x53   : > { %v2462_v2 = vld [vmem:[#allocation4] sm:$0xff]   ;;  %1820 = vmatprep.subr.bf16.mxu1 %v2459_v1  ;;  %v2474_v6 = vld [vmem:[#allocation4 + $0x8] sm:$0xff]   ;;  %v2483_v9 = vld [vmem:[#allocation4 + $0xd0] sm:$0xff]   ;;  %s431_s22 = scalar_select %p430_p6, %s2353_s21, 1  ;;  %vm1605_vm1 = vcmask 15360  }
  0x54   : > { %v2465_v3 = vld [vmem:[#allocation4 + $0x80] sm:$0xff]   ;;  %1793 = vmatpush3.bf16.msra.mxu0 %v2462_v2  ;;  %v2477_v7 = vld [vmem:[#allocation4 + $0x88] sm:$0xff]   ;;  %v2486_v10 = vld [vmem:[#allocation4 + $0x10] sm:$0xff]   ;;  %s2780_s25 = smov (!%p436_p8, %s1708_s25), 7 }
  0x55   : > { %1821 = vmatpush3.bf16.msra.mxu1 %v2465_v3  ;;  %1794 = vmatprep.subr.bf16.mxu0 %v2468_v4  ;;  %v2489_v11 = vld [vmem:[#allocation4 + $0x90] sm:$0xff]   ;;  %v2492_v12 = vld [vmem:[#allocation4 + $0x58] sm:$0xff]   ;;  %v2504_v16 = vld [vmem:[#allocation4 + $0x60] sm:$0xff]   ;;  %s2051_s23 = smul.u32 48, %s431_s22  ;;  %s1709_s14 = sshll.u32 %s2780_s25, 3 }
  0x56   : > { %1822 = vmatprep.subr.bf16.mxu1 %v2471_v5  ;;  %v2495_v13 = vld [vmem:[#allocation4 + $0xd8] sm:$0xff]   ;;  %v2507_v17 = vld [vmem:[#allocation4 + $0xe0] sm:$0xff]   ;;  %v2517_v20 = vld [vmem:[#allocation4 + $0x68] sm:$0xff]  }
  0x57   : > { %v2498_v14 = vld [vmem:[#allocation4 + $0x18] sm:$0xff]   ;;  %v2511_v18 = vld [vmem:[#allocation4 + $0x20] sm:$0xff]   ;;  %v2520_v21 = vld [vmem:[#allocation4 + $0xe8] sm:$0xff]   ;;  %s2550_s29 = scalar_lea.vmem %s2747_s0, %s2051_s23 }
  0x58   : > { %1795 = vmatpush3.bf16.msra.mxu0 %v2474_v6  ;;  %v2501_v15 = vld [vmem:[#allocation4 + $0x98] sm:$0xff]   ;;  %v2514_v19 = vld [vmem:[#allocation4 + $0xa0] sm:$0xff]   ;;  %v2524_v22 = vld [vmem:[#allocation4 + $0x28] sm:$0xff]   ;;  %s439_s26 = scalar_lea.vmem %s2774_s17, %s1709_s14 }
  0x59   : > { %1823 = vmatpush3.bf16.msra.mxu1 %v2477_v7  ;;  %1796 = vmatprep.subr.bf16.mxu0 %v2480_v8  ;;  %v2527_v23 = vld [vmem:[#allocation4 + $0xa8] sm:$0xff]   ;;  %v2530_v24 = vld [vmem:[#allocation4 + $0x70] sm:$0xff]   ;;  %v2542_v28 = vld [vmem:[#allocation4 + $0x78] sm:$0xff]  }
  0x5a   : > { %1824 = vmatprep.subr.bf16.mxu1 %v2483_v9  ;;  %v2533_v25 = vld [vmem:[#allocation4 + $0xf0] sm:$0xff]   ;;  %v2545_v29 = vld [vmem:[#allocation4 + $0xf8] sm:$0xff]   ;;  %v443_v32 = vld [vmem:[%s2550_s29 + $0x8] sm:$0xff] }
  0x5b   : > { %v2536_v26 = vld [vmem:[#allocation4 + $0x30] sm:$0xff]   ;;  %v2553_v30 = vld [vmem:[#allocation4 + $0x38] sm:$0xff]   ;;  %v442_v34 = vld [vmem:[%s2550_s29] sm:$0xff]  ;;  %v449_v35 = vunpack.c.l.s8.bf16 %v443_v32  ;;  %v455_v41 = vunpack.c.h.s8.bf16 %v443_v32 }
  0x5c   : > { %1797 = vmatpush3.bf16.msra.mxu0 %v2486_v10  ;;  %v2539_v27 = vld [vmem:[#allocation4 + $0xb0] sm:$0xff]   ;;  %v2556_v31 = vld [vmem:[#allocation4 + $0xb8] sm:$0xff]   ;;  %v448_v38 = vunpack.c.l.s8.bf16 %v442_v34  ;;  %v2564_v40 = vld [vmem:[#allocation4 + $0x140] sm:$0xff]   ;;  %v454_v47 = vunpack.c.h.s8.bf16 %v442_v34 }
  0x5d   : > { %1825 = vmatpush3.bf16.msra.mxu1 %v2489_v11  ;;  %1798 = vmatprep.subr.bf16.mxu0 %v2492_v12  ;;  %v445_v33 = vld [vmem:[%s2550_s29 + $0x18] sm:$0xff]  ;;  %v444_v37 = vld [vmem:[%s2550_s29 + $0x10] sm:$0xff]  ;;  %v2567_v42 = vld [vmem:[#allocation4 + $0x100] sm:$0xff]  }
  0x5e   : > { %1826 = vmatprep.subr.bf16.mxu1 %v2495_v13  ;;  %v451_v36 = vunpack.c.l.s8.bf16 %v445_v33  ;;  %v450_v39 = vunpack.c.l.s8.bf16 %v444_v37  ;;  %901 = vmatprep.mubr.bf16.mxu0 %v449_v35  ;;  %v457_v43 = vunpack.c.h.s8.bf16 %v445_v33  ;;  %v2569_v44 = vld [vmem:[#allocation4 + $0x148] sm:$0xff]   ;;  %v2578_v46 = vld [vmem:[#allocation4 + $0x150] sm:$0xff]   ;;  %v456_v48 = vunpack.c.h.s8.bf16 %v444_v37  ;;  %v2586_v50 = vld [vmem:[#allocation4 + $0x158] sm:$0xff]  }
  0x5f   : > { %v2575_v45 = vld [vmem:[#allocation4 + $0x108] sm:$0xff]   ;;  %v2583_v49 = vld [vmem:[#allocation4 + $0x110] sm:$0xff]   ;;  %v2591_v51 = vld [vmem:[#allocation4 + $0x118] sm:$0xff]  }
  0x60   : > { %1799 = vmatpush3.bf16.msra.mxu0 %v2498_v14  ;;  %950 = vmatprep.mubr.bf16.mxu1 %v451_v36  ;;  %v2594_v52 = vld [vmem:[#allocation4 + $0x160] sm:$0xff]   ;;  %v447_v53 = vld [vmem:[%s2550_s29 + $0x28] sm:$0xff]  ;;  %v2148_v60 = vld [vmem:[#allocation4 + $0x170] sm:$0xff]  }
  0x61   : > { %1827 = vmatpush3.bf16.msra.mxu1 %v2501_v15  ;;  %1800 = vmatprep.subr.bf16.mxu0 %v2504_v16  ;;  %v461_v54 = vld [vmem:[%s2447_s13 + $0x8] sm:$0xff]  ;;  %v2601_v55 = vld [vmem:[#allocation4 + $0x120] sm:$0xff]   ;;  %v453_v56 = vunpack.c.l.s8.bf16 %v447_v53  ;;  %v2149_v61 = vld [vmem:[#allocation4 + $0x130] sm:$0xff]  }
  0x62   : > { %1828 = vmatprep.subr.bf16.mxu1 %v2507_v17  ;;  %v467_v57 = vunpack.c.l.s8.bf16 %v461_v54  ;;  %v2146_v58 = vld [vmem:[#allocation4 + $0x168] sm:$0xff]   ;;  %v2150_v62 = vld [vmem:[#allocation4 + $0x178] sm:$0xff]   ;;  %v460_v63 = vld [vmem:[%s2447_s13] sm:$0xff] }
  0x63   : > { %v2147_v59 = vld [vmem:[#allocation4 + $0x128] sm:$0xff]   ;;  %v2164_v32 = vld [vmem:[%s2752_s5 + $0x20] sm:$0xff]   ;;  %v2166_v34 = vld [vmem:[%s2752_s5 + $0x30] sm:$0xff]  }
  0x64   : > { %1801 = vmatpush3.bf16.msra.mxu0 %v2511_v18  ;;  %v2165_v33 = vld [vmem:[%s2752_s5 + $0x28] sm:$0xff]   ;;  %v2167_v35 = vld [vmem:[%s2752_s5 + $0x38] sm:$0xff]  }
  0x65   : > { %1829 = vmatpush3.bf16.msra.mxu1 %v2514_v19  ;;  %1802 = vmatprep.subr.bf16.mxu0 %v2517_v20 }
  0x66   : > { %1830 = vmatprep.subr.bf16.mxu1 %v2520_v21 }
  0x68   : > { %1803 = vmatpush3.bf16.msra.mxu0 %v2524_v22 }
  0x69   : > { %1831 = vmatpush3.bf16.msra.mxu1 %v2527_v23  ;;  %1804 = vmatprep.subr.bf16.mxu0 %v2530_v24 }
  0x6a   : > { %1832 = vmatprep.subr.bf16.mxu1 %v2533_v25 }
  0x6c   : > { %1805 = vmatpush3.bf16.msra.mxu0 %v2536_v26 }
  0x6d   : > { %1833 = vmatpush3.bf16.msra.mxu1 %v2539_v27  ;;  %1806 = vmatprep.subr.bf16.mxu0 %v2542_v28 }
  0x6e   : > { %1834 = vmatprep.subr.bf16.mxu1 %v2545_v29 }
  0x70   : > { %1807 = vmatpush3.bf16.msra.mxu0 %v2553_v30 }
  0x71   : > { %1835 = vmatpush3.bf16.msra.mxu1 %v2556_v31  ;;  %1848 = vmatprep.subr.bf16.mxu0 %v2564_v40 }
  0x72   : > { %1876 = vmatprep.subr.bf16.mxu1 %v2457_v0  ;;  %v2151_v0 = vld [vmem:[#allocation4 + $0x138] sm:$0xff]  }
  0x73   : > { %902 = vmatmul.mubr.bf16.vlgmr.msra.gmra.mrb[0].mxu0 %v448_v38  ;;  %v2695_v38 = vld [vmem:[%s2750_s3] ss:$0 sm:$0xff] }
  0x74   : > { %951 = vmatmul.mubr.bf16.vlgmr.msra.gmra.mrb[0].mxu1 %v450_v39  ;;  %1849 = vmatpush3.bf16.msra.mxu0 %v2567_v42 }
  0x75   : > { %1877 = vmatpush3.bf16.msra.mxu1 %v2462_v2  ;;  %1850 = vmatprep.subr.bf16.mxu0 %v2569_v44  ;;  %v446_v2 = vld [vmem:[%s2550_s29 + $0x20] sm:$0xff] }
  0x76   : > { %1878 = vmatprep.subr.bf16.mxu1 %v2468_v4  ;;  %909 = vmatprep.mubr.bf16.mxu0 %v455_v41  ;;  %v466_v4 = vunpack.c.l.s8.bf16 %v460_v63 }
  0x77   : > { %958 = vmatprep.mubr.bf16.mxu1 %v457_v43 }
  0x78   : > { %1851 = vmatpush3.bf16.msra.mxu0 %v2575_v45 }
  0x79   : > { %1879 = vmatpush3.bf16.msra.mxu1 %v2474_v6  ;;  %1852 = vmatprep.subr.bf16.mxu0 %v2578_v46  ;;  %v452_v6 = vunpack.c.l.s8.bf16 %v446_v2 }
  0x7a   : > { %1880 = vmatprep.subr.bf16.mxu1 %v2480_v8  ;;  %v459_v8 = vunpack.c.h.s8.bf16 %v447_v53 }
  0x7b   : > { %910 = vmatmul.mubr.bf16.gmra.mrb[4].mxu0 %v454_v47 }
  0x7c   : > { %959 = vmatmul.mubr.bf16.gmra.mrb[4].mxu1 %v456_v48  ;;  %1853 = vmatpush3.bf16.msra.mxu0 %v2583_v49 }
  0x7d   : > { %1881 = vmatpush3.bf16.msra.mxu1 %v2486_v10  ;;  %1854 = vmatprep.subr.bf16.mxu0 %v2586_v50  ;;  %v473_v10 = vunpack.c.h.s8.bf16 %v461_v54 }
  0x7e   : > { %1882 = vmatprep.subr.bf16.mxu1 %v2492_v12  ;;  %999 = vmatprep.mubr.bf16.mxu0 %v453_v56  ;;  %v472_v12 = vunpack.c.h.s8.bf16 %v460_v63 }
  0x7f   : > { %1048 = vmatprep.mubr.bf16.mxu1 %v467_v57 }
  0x80   : > { %1855 = vmatpush3.bf16.msra.mxu0 %v2591_v51 }
  0x81   : > { %1883 = vmatpush3.bf16.msra.mxu1 %v2498_v14  ;;  %1856 = vmatprep.subr.bf16.mxu0 %v2594_v52  ;;  %v463_v14 = vld [vmem:[%s2447_s13 + $0x18] sm:$0xff] }
  0x82   : > { %1884 = vmatprep.subr.bf16.mxu1 %v2504_v16  ;;  %v458_v16 = vunpack.c.h.s8.bf16 %v446_v2 }
  0x84   : > { %1857 = vmatpush3.bf16.msra.mxu0 %v2601_v55 }
  0x85   : > { %1885 = vmatpush3.bf16.msra.mxu1 %v2511_v18  ;;  %1858 = vmatprep.subr.bf16.mxu0 %v2146_v58  ;;  %v469_v18 = vunpack.c.l.s8.bf16 %v463_v14 }
  0x86   : > { %1886 = vmatprep.subr.bf16.mxu1 %v2517_v20  ;;  %v2152_v20 = vld [vmem:[%s2751_s4] sm:$0xff]  }
  0x88   : > { %1859 = vmatpush3.bf16.msra.mxu0 %v2147_v59 }
  0x89   : > { %1887 = vmatpush3.bf16.msra.mxu1 %v2524_v22  ;;  %1860 = vmatprep.subr.bf16.mxu0 %v2148_v60  ;;  %v2154_v22 = vld [vmem:[%s2751_s4 + $0x10] sm:$0xff]  }
  0x8a   : > { %1888 = vmatprep.subr.bf16.mxu1 %v2530_v24  ;;  %v2156_v24 = vld [vmem:[%s2751_s4 + $0x20] sm:$0xff]  }
  0x8c   : > { %1861 = vmatpush3.bf16.msra.mxu0 %v2149_v61 }
  0x8d   : > { %1889 = vmatpush3.bf16.msra.mxu1 %v2536_v26  ;;  %1862 = vmatprep.subr.bf16.mxu0 %v2150_v62  ;;  %v2158_v26 = vld [vmem:[%s2751_s4 + $0x30] sm:$0xff]  }
  0x8e   : > { %1890 = vmatprep.subr.bf16.mxu1 %v2542_v28  ;;  %v2160_v28 = vld [vmem:[%s2752_s5] sm:$0xff]  }
  0x90   : > { %1863 = vmatpush3.bf16.msra.mxu0 %v2151_v0 }
  0x91   : > { %1891 = vmatpush3.bf16.msra.mxu1 %v2553_v30  ;;  %1904 = vmatprep.subr.bf16.mxu0 %v2459_v1  ;;  %v465_v1 = vld [vmem:[%s2447_s13 + $0x28] sm:$0xff]  ;;  %v2162_v30 = vld [vmem:[%s2752_s5 + $0x10] sm:$0xff]  }
  0x92   : > { %1932 = vmatprep.subr.bf16.mxu1 %v2564_v40 }
  0x93   : > { %1000 = vmatmul.mubr.bf16.vlgmr.msra.gmra.mrb[8].mxu0 %v452_v6 }
  0x94   : > { %1049 = vmatmul.mubr.bf16.vlgmr.msra.gmra.mrb[8].mxu1 %v466_v4  ;;  %1905 = vmatpush3.bf16.msra.mxu0 %v2465_v3  ;;  %v471_v3 = vunpack.c.l.s8.bf16 %v465_v1 }
  0x95   : > { %1933 = vmatpush3.bf16.msra.mxu1 %v2567_v42  ;;  %1906 = vmatprep.subr.bf16.mxu0 %v2471_v5  ;;  %v464_v5 = vld [vmem:[%s2447_s13 + $0x20] sm:$0xff] }
  0x96   : > { %1934 = vmatprep.subr.bf16.mxu1 %v2569_v44  ;;  %1007 = vmatprep.mubr.bf16.mxu0 %v459_v8 }
  0x97   : > { %1056 = vmatprep.mubr.bf16.mxu1 %v473_v10 }
  0x98   : > { %1907 = vmatpush3.bf16.msra.mxu0 %v2477_v7  ;;  %v462_v7 = vld [vmem:[%s2447_s13 + $0x10] sm:$0xff] }
  0x99   : > { %1935 = vmatpush3.bf16.msra.mxu1 %v2575_v45  ;;  %1908 = vmatprep.subr.bf16.mxu0 %v2483_v9  ;;  %v470_v9 = vunpack.c.l.s8.bf16 %v464_v5 }
  0x9a   : > { %1936 = vmatprep.subr.bf16.mxu1 %v2578_v46 }
  0x9b   : > { %1008 = vmatmul.mubr.bf16.gmra.mrb[12].mxu0 %v458_v16 }
  0x9c   : > { %1057 = vmatmul.mubr.bf16.gmra.mrb[12].mxu1 %v472_v12  ;;  %1909 = vmatpush3.bf16.msra.mxu0 %v2489_v11  ;;  %v468_v11 = vunpack.c.l.s8.bf16 %v462_v7 }
  0x9d   : > { %1937 = vmatpush3.bf16.msra.mxu1 %v2583_v49  ;;  %1910 = vmatprep.subr.bf16.mxu0 %v2495_v13  ;;  %v477_v13 = vunpack.c.h.s8.bf16 %v465_v1 }
  0x9e   : > { %1938 = vmatprep.subr.bf16.mxu1 %v2586_v50  ;;  %1097 = vmatprep.mubr.bf16.mxu0 %v469_v18 }
  0x9f   : > { %1146 = vmatprep.mubr.bf16.mxu1 %v471_v3 }
  0xa0   : > { %1911 = vmatpush3.bf16.msra.mxu0 %v2501_v15  ;;  %v475_v15 = vunpack.c.h.s8.bf16 %v463_v14 }
  0xa1   : > { %1939 = vmatpush3.bf16.msra.mxu1 %v2591_v51  ;;  %1912 = vmatprep.subr.bf16.mxu0 %v2507_v17  ;;  %v476_v17 = vunpack.c.h.s8.bf16 %v464_v5 }
  0xa2   : > { %1940 = vmatprep.subr.bf16.mxu1 %v2594_v52 }
  0xa4   : > { %1913 = vmatpush3.bf16.msra.mxu0 %v2514_v19  ;;  %v474_v19 = vunpack.c.h.s8.bf16 %v462_v7 }
  0xa5   : > { %1941 = vmatpush3.bf16.msra.mxu1 %v2601_v55  ;;  %1914 = vmatprep.subr.bf16.mxu0 %v2520_v21  ;;  %v2153_v21 = vld [vmem:[%s2751_s4 + $0x8] sm:$0xff]  }
  0xa6   : > { %1942 = vmatprep.subr.bf16.mxu1 %v2146_v58 }
  0xa8   : > { %1915 = vmatpush3.bf16.msra.mxu0 %v2527_v23  ;;  %v2155_v23 = vld [vmem:[%s2751_s4 + $0x18] sm:$0xff]  }
  0xa9   : > { %1943 = vmatpush3.bf16.msra.mxu1 %v2147_v59  ;;  %1916 = vmatprep.subr.bf16.mxu0 %v2533_v25  ;;  %v2157_v25 = vld [vmem:[%s2751_s4 + $0x28] sm:$0xff]  }
  0xaa   : > { %1944 = vmatprep.subr.bf16.mxu1 %v2148_v60 }
  0xac   : > { %1917 = vmatpush3.bf16.msra.mxu0 %v2539_v27  ;;  %v2159_v27 = vld [vmem:[%s2751_s4 + $0x38] sm:$0xff]  }
  0xad   : > { %1945 = vmatpush3.bf16.msra.mxu1 %v2149_v61  ;;  %1918 = vmatprep.subr.bf16.mxu0 %v2545_v29  ;;  %v2161_v29 = vld [vmem:[%s2752_s5 + $0x8] sm:$0xff]  }
  0xae   : > { %1946 = vmatprep.subr.bf16.mxu1 %v2150_v62 }
  0xb0   : > { %1919 = vmatpush3.bf16.msra.mxu0 %v2556_v31  ;;  %v2163_v31 = vld [vmem:[%s2752_s5 + $0x18] sm:$0xff]  }
  0xb1   : > { %1947 = vmatpush3.bf16.msra.mxu1 %v2151_v0  ;;  %2008 = vmatprep.subr.bf16.mxu0 %v2152_v20 }
  0xb2   : > { %1988 = vmatprep.subr.bf16.mxu1 %v2160_v28 }
  0xb3   : > { %1098 = vmatmul.mubr.bf16.vlgmr.msra.gmra.mrb[16].mxu0 %v468_v11 }
  0xb4   : > { %1147 = vmatmul.mubr.bf16.vlgmr.msra.gmra.mrb[16].mxu1 %v470_v9  ;;  %1105 = vmatprep.mubr.bf16.mxu0 %v475_v15 }
  0xb5   : > { %1154 = vmatprep.mubr.bf16.mxu1 %v477_v13  ;;  %2009 = vmatpush3.bf16.msra.mxu0 %v2152_v20 }
  0xb6   : > { %2010 = vmatprep.subr.bf16.mxu0 %v2153_v21  ;;  %1989 = vmatpush3.bf16.msra.mxu1 %v2160_v28 }
  0xb7   : > { %1990 = vmatprep.subr.bf16.mxu1 %v2161_v29 }
  0xb9   : > { %2011 = vmatpush3.bf16.msra.mxu0 %v2153_v21 }
  0xba   : > { %2012 = vmatprep.subr.bf16.mxu0 %v2154_v22  ;;  %1991 = vmatpush3.bf16.msra.mxu1 %v2161_v29 }
  0xbb   : > { %1106 = vmatmul.mubr.bf16.gmra.mrb[20].mxu0 %v474_v19  ;;  %1992 = vmatprep.subr.bf16.mxu1 %v2162_v30 }
  0xbc   : > { %1155 = vmatmul.mubr.bf16.gmra.mrb[20].mxu1 %v476_v17 }
  0xbd   : > { %2013 = vmatpush3.bf16.msra.mxu0 %v2154_v22 }
  0xbe   : > { %2014 = vmatprep.subr.bf16.mxu0 %v2155_v23  ;;  %1993 = vmatpush3.bf16.msra.mxu1 %v2162_v30 }
  0xbf   : > { %1994 = vmatprep.subr.bf16.mxu1 %v2163_v31 }
  0xc1   : > { %2015 = vmatpush3.bf16.msra.mxu0 %v2155_v23 }
  0xc2   : > { %2016 = vmatprep.subr.bf16.mxu0 %v2156_v24  ;;  %1995 = vmatpush3.bf16.msra.mxu1 %v2163_v31 }
  0xc3   : > { %1996 = vmatprep.subr.bf16.mxu1 %v2164_v32 }
  0xc5   : > { %2017 = vmatpush3.bf16.msra.mxu0 %v2156_v24 }
  0xc6   : > { %2018 = vmatprep.subr.bf16.mxu0 %v2157_v25  ;;  %1997 = vmatpush3.bf16.msra.mxu1 %v2164_v32 }
  0xc7   : > { %1998 = vmatprep.subr.bf16.mxu1 %v2165_v33 }
  0xc9   : > { %2019 = vmatpush3.bf16.msra.mxu0 %v2157_v25 }
  0xca   : > { %2020 = vmatprep.subr.bf16.mxu0 %v2158_v26  ;;  %1999 = vmatpush3.bf16.msra.mxu1 %v2165_v33 }
  0xcb   : > { %2000 = vmatprep.subr.bf16.mxu1 %v2166_v34 }
  0xcd   : > { %2021 = vmatpush3.bf16.msra.mxu0 %v2158_v26 }
  0xce   : > { %2022 = vmatprep.subr.bf16.mxu0 %v2159_v27  ;;  %2001 = vmatpush3.bf16.msra.mxu1 %v2166_v34 }
  0xcf   : > { %2002 = vmatprep.subr.bf16.mxu1 %v2167_v35 }
  0xd1   : > { %2023 = vmatpush3.bf16.msra.mxu0 %v2159_v27 }
  0xd2   : > { %2003 = vmatpush3.bf16.msra.mxu1 %v2167_v35 }
 0x146   : > { %v1808_v36 = vpop.f32.mrb[0].mxu0 }
 0x147   : > { %v1836_v37 = vpop.f32.mrb[0].mxu1  ;;  %v1809_v39 = vpop.f32.mrb[1].mxu0 }
 0x148   : > { %v1837_v40 = vpop.f32.mrb[1].mxu1  ;;  %v1810_v41 = vadd.f32 %v1809_v39, %v1808_v36  ;;  %v1811_v43 = vpop.f32.mrb[2].mxu0 }
 0x149   : > { %v1838_v42 = vadd.f32 %v1837_v40, %v1836_v37  ;;  %v1839_v44 = vpop.f32.mrb[2].mxu1  ;;  %v1812_v45 = vpop.f32.mrb[3].mxu0 }
 0x14a   : > { %v1840_v46 = vpop.f32.mrb[3].mxu1  ;;  %v904_v47 = vadd.f32 %v1810_v41, %v2695_v38  ;;  %v1813_v48 = vadd.f32 %v1812_v45, %v1811_v43 }
 0x14b   : > { %v1841_v49 = vadd.f32 %v1840_v46, %v1839_v44 }
 0x14c   : > { %v953_v50 = vadd.f32 %v1838_v42, %v904_v47  ;;  %v907_v51 = vadd.f32 %v1813_v48, %v2695_v38 }
 0x14e   : > { %v956_v52 = vadd.f32 %v1841_v49, %v907_v51  ;;  %v1814_v53 = vpop.f32.mrb[4].mxu0 }
 0x14f   : > { %v1842_v54 = vpop.f32.mrb[4].mxu1  ;;  %v1815_v55 = vpop.f32.mrb[5].mxu0 }
 0x150   : > { %v1843_v56 = vpop.f32.mrb[5].mxu1  ;;  %v1816_v57 = vadd.f32 %v1815_v55, %v1814_v53  ;;  %v1817_v58 = vpop.f32.mrb[6].mxu0 }
 0x151   : > { %v1844_v59 = vadd.f32 %v1843_v56, %v1842_v54  ;;  %v1845_v60 = vpop.f32.mrb[6].mxu1  ;;  %v1818_v61 = vpop.f32.mrb[7].mxu0 }
 0x152   : > { %v1846_v62 = vpop.f32.mrb[7].mxu1  ;;  %v912_v63 = vadd.f32 %v1816_v57, %v2695_v38  ;;  %v1819_v0 = vadd.f32 %v1818_v61, %v1817_v58 }
 0x153   : > { %v1847_v2 = vadd.f32 %v1846_v62, %v1845_v60 }
 0x154   : > { %v915_v4 = vadd.f32 %v1819_v0, %v2695_v38  ;;  %v961_v6 = vadd.f32 %v1844_v59, %v912_v63 }
 0x156   : > { %v964_v8 = vadd.f32 %v1847_v2, %v915_v4 }
 0x166   : > { %v1864_v12 = vpop.f32.mrb[8].mxu0 }
 0x167   : > { %v1892_v10 = vpop.f32.mrb[8].mxu1  ;;  %v1865_v16 = vpop.f32.mrb[9].mxu0 }
 0x168   : > { %v1893_v14 = vpop.f32.mrb[9].mxu1  ;;  %v1866_v3 = vadd.f32 %v1865_v16, %v1864_v12  ;;  %v1867_v5 = vpop.f32.mrb[10].mxu0 }
 0x169   : > { %v1894_v1 = vadd.f32 %v1893_v14, %v1892_v10  ;;  %v1895_v18 = vpop.f32.mrb[10].mxu1  ;;  %v1868_v9 = vpop.f32.mrb[11].mxu0 }
 0x16a   : > { %v1896_v7 = vpop.f32.mrb[11].mxu1  ;;  %v1002_v13 = vadd.f32 %v1866_v3, %v953_v50  ;;  %v1869_v15 = vadd.f32 %v1868_v9, %v1867_v5 }
 0x16b   : > { %v1897_v11 = vadd.f32 %v1896_v7, %v1895_v18  ;;  %v1051_v50 = vadd.f32 %v1894_v1, %v2695_v38 }
 0x16c   : > { %v1163_v17 = vmax.f32 %v1002_v13, 0.0  ;;  %v1005_v19 = vadd.f32 %v1869_v15, %v956_v52 }
 0x16d   : > { %v1054_v56 = vadd.f32 %v1897_v11, %v2695_v38 }
 0x16e   : > { %v1164_v21 = vmax.f32 %v1005_v19, 0.0  ;;  %v1870_v22 = vpop.f32.mrb[12].mxu0  ;;  %v1167_v27 = vmin.f32 %v1163_v17, 1.984375 }
 0x16f   : > { %v1898_v20 = vpop.f32.mrb[12].mxu1  ;;  %v1871_v24 = vpop.f32.mrb[13].mxu0 }
 0x170   : > { %v1899_v23 = vpop.f32.mrb[13].mxu1  ;;  %v1168_v28 = vmin.f32 %v1164_v21, 1.984375  ;;  %v1872_v29 = vadd.f32 %v1871_v24, %v1870_v22  ;;  %v1873_v30 = vpop.f32.mrb[14].mxu0 }
 0x171   : > { %v1900_v25 = vadd.f32 %v1899_v23, %v1898_v20  ;;  %v1901_v26 = vpop.f32.mrb[14].mxu1  ;;  %v1874_v32 = vpop.f32.mrb[15].mxu0 }
 0x172   : > { %v1902_v31 = vpop.f32.mrb[15].mxu1  ;;  %v1010_v34 = vadd.f32 %v1872_v29, %v961_v6  ;;  %v1875_v35 = vadd.f32 %v1874_v32, %v1873_v30  ;;  %v1171_v36 = vpack.c.bf16 %v1168_v28, %v1167_v27  ;;  %v1775_v32 = vld [vmem:[%s2753_s6] ss:$0 sm:$0xff] }
 0x173   : > { %v1903_v33 = vadd.f32 %v1902_v31, %v1901_v26  ;;  %v1059_v10 = vadd.f32 %v1900_v25, %v2695_v38  ;;  %v2169_v26 = vld [vmem:[%s2754_s7 + $0x8] sm:$0xff]  }
 0x174   : > { %v1165_v37 = vmax.f32 %v1010_v34, 0.0  ;;  %v1013_v39 = vadd.f32 %v1875_v35, %v964_v8  ;;  %2024 = vmatprep.mubr.bf16.mxu0 %v1171_v36 }
 0x175   : > { %v1062_v18 = vadd.f32 %v1903_v33, %v2695_v38  ;;  %v2168_v38 = vld [vmem:[%s2754_s7] sm:$0xff]  }
 0x176   : > { %v1166_v40 = vmax.f32 %v1013_v39, 0.0  ;;  %v1169_v41 = vmin.f32 %v1165_v37, 1.984375  ;;  %2028 = vmatprep.subr.bf16.mxu0 %v2168_v38 }
 0x178   : > { %v1170_v42 = vmin.f32 %v1166_v40, 1.984375 }
 0x17a   : > { %v1172_v43 = vpack.c.bf16 %v1170_v42, %v1169_v41 }
 0x17c   : > { %2025 = vmatmul.mubr.bf16.vlgmr.msra.gmra.mrb[24].mxu0 %v1172_v43 }
 0x17d   : > { %2029 = vmatpush3.bf16.msra.mxu0 %v2168_v38 }
 0x17e   : > { %2030 = vmatprep.subr.bf16.mxu0 %v2169_v26 }
 0x181   : > { %2031 = vmatpush3.bf16.msra.mxu0 %v2169_v26 }
 0x186   : > { %v1920_v45 = vpop.f32.mrb[16].mxu0 }
 0x187   : > { %v1948_v44 = vpop.f32.mrb[16].mxu1  ;;  %v1921_v47 = vpop.f32.mrb[17].mxu0 }
 0x188   : > { %v1949_v46 = vpop.f32.mrb[17].mxu1  ;;  %v1922_v51 = vadd.f32 %v1921_v47, %v1920_v45  ;;  %v1923_v52 = vpop.f32.mrb[18].mxu0 }
 0x189   : > { %v1950_v48 = vadd.f32 %v1949_v46, %v1948_v44  ;;  %v1951_v49 = vpop.f32.mrb[18].mxu1  ;;  %v1924_v54 = vpop.f32.mrb[19].mxu0 }
 0x18a   : > { %v1952_v53 = vpop.f32.mrb[19].mxu1  ;;  %v1100_v57 = vadd.f32 %v1922_v51, %v1051_v50  ;;  %v1925_v58 = vadd.f32 %v1924_v54, %v1923_v52 }
 0x18b   : > { %v1953_v55 = vadd.f32 %v1952_v53, %v1951_v49 }
 0x18c   : > { %v1149_v59 = vadd.f32 %v1950_v48, %v1100_v57  ;;  %v1103_v60 = vadd.f32 %v1925_v58, %v1054_v56  ;;  %v2171_v56 = vld [vmem:[%s2756_s9 + $0x8] sm:$0xff]   ;;  %v1776_v57 = vld [vmem:[%s2755_s8] ss:$0 sm:$0xff] }
 0x18e   : > { %v1173_v62 = vmax.f32 %v1149_v59, 0.0  ;;  %v1152_v63 = vadd.f32 %v1953_v55, %v1103_v60  ;;  %v1926_v0 = vpop.f32.mrb[20].mxu0  ;;  %v2170_v55 = vld [vmem:[%s2756_s9] sm:$0xff]  }
 0x18f   : > { %v1954_v61 = vpop.f32.mrb[20].mxu1  ;;  %v1927_v4 = vpop.f32.mrb[21].mxu0  ;;  %2036 = vmatprep.subr.bf16.mxu1 %v2170_v55 }
 0x190   : > { %v1955_v2 = vpop.f32.mrb[21].mxu1  ;;  %v1174_v12 = vmax.f32 %v1152_v63, 0.0  ;;  %v1928_v14 = vadd.f32 %v1927_v4, %v1926_v0  ;;  %v1929_v16 = vpop.f32.mrb[22].mxu0  ;;  %v1177_v7 = vmin.f32 %v1173_v62, 1.984375 }
 0x191   : > { %v1956_v6 = vadd.f32 %v1955_v2, %v1954_v61  ;;  %v1957_v8 = vpop.f32.mrb[22].mxu1  ;;  %v1930_v3 = vpop.f32.mrb[23].mxu0 }
 0x192   : > { %v1958_v1 = vpop.f32.mrb[23].mxu1  ;;  %v1178_v9 = vmin.f32 %v1174_v12, 1.984375  ;;  %v1108_v11 = vadd.f32 %v1928_v14, %v1059_v10  ;;  %v1931_v13 = vadd.f32 %v1930_v3, %v1929_v16 }
 0x193   : > { %v1959_v5 = vadd.f32 %v1958_v1, %v1957_v8 }
 0x194   : > { %v1157_v15 = vadd.f32 %v1956_v6, %v1108_v11  ;;  %v1111_v17 = vadd.f32 %v1931_v13, %v1062_v18  ;;  %v1181_v19 = vpack.c.bf16 %v1178_v9, %v1177_v7 }
 0x196   : > { %v1175_v20 = vmax.f32 %v1157_v15, 0.0  ;;  %v1160_v21 = vadd.f32 %v1959_v5, %v1111_v17  ;;  %2004 = vmatprep.mubr.bf16.mxu1 %v1181_v19  ;;  %v1781_v5 = vld [vmem:[%s2757_s10] ss:$0 sm:$0xff] }
 0x198   : > { %v1176_v22 = vmax.f32 %v1160_v21, 0.0  ;;  %v1179_v23 = vmin.f32 %v1175_v20, 1.984375 }
 0x19a   : > { %v1180_v24 = vmin.f32 %v1176_v22, 1.984375 }
 0x19c   : > { %v1182_v25 = vpack.c.bf16 %v1180_v24, %v1179_v23 }
 0x19e   : > { %2005 = vmatmul.mubr.bf16.vlgmr.msra.gmra.mrb[24].mxu1 %v1182_v25 }
 0x19f   : > { %2037 = vmatpush3.bf16.msra.mxu1 %v2170_v55 }
 0x1a0   : > { %2038 = vmatprep.subr.bf16.mxu1 %v2171_v56 }
 0x1a3   : > { %2039 = vmatpush3.bf16.msra.mxu1 %v2171_v56 }
 0x24f   : > { %v2026_v27 = vpop.f32.mrb[24].mxu0 }
 0x250   : > { %v1394_v28 = vpop.f32.mrb[25].mxu0 }
 0x251   : > { %v2027_v29 = vpop.f32.mrb[26].mxu0 }
 0x252   : > { %v1397_v30 = vpop.f32.mrb[27].mxu0 }
 0x271   : > { %v2006_v31 = vpop.f32.mrb[24].mxu1 }
 0x272   : > { %v1403_v33 = vadd.f32 %v2026_v27, %v2006_v31  ;;  %v1297_v34 = vpop.f32.mrb[25].mxu1 }
 0x273   : > { %v1395_v35 = vadd.f32 %v1394_v28, %v1297_v34  ;;  %v2007_v36 = vpop.f32.mrb[26].mxu1 }
 0x274   : > { %v1418_v37 = vadd.f32 %v1775_v32, %v1403_v33  ;;  %v1406_v39 = vadd.f32 %v2027_v29, %v2007_v36  ;;  %v1300_v40 = vpop.f32.mrb[27].mxu1 }
 0x275   : > { %v1416_v41 = vadd.f32 %v1775_v32, %v1395_v35  ;;  %v1398_v42 = vadd.f32 %v1397_v30, %v1300_v40 }
 0x276   : > { %v1422_v43 = vmax.f32 %v1418_v37, 0.0  ;;  %v1419_v44 = vadd.f32 %v1775_v32, %v1406_v39 }
 0x277   : > { %v1420_v45 = vmax.f32 %v1416_v41, 0.0  ;;  %v1417_v46 = vadd.f32 %v1775_v32, %v1398_v42 }
 0x278   : > { %v1423_v47 = vmax.f32 %v1419_v44, 0.0  ;;  %v1426_v49 = vmin.f32 %v1422_v43, 1.984375 }
 0x279   : > { %v1421_v48 = vmax.f32 %v1417_v46, 0.0  ;;  %v1424_v51 = vmin.f32 %v1420_v45, 1.984375 }
 0x27a   : > { %v1427_v50 = vmin.f32 %v1423_v47, 1.984375 }
 0x27b   : > { %v1425_v52 = vmin.f32 %v1421_v48, 1.984375 }
 0x27c   : > { %v1429_v53 = vpack.c.bf16 %v1427_v50, %v1426_v49 }
 0x27d   : > { %v1428_v54 = vpack.c.bf16 %v1425_v52, %v1424_v51 }
 0x27f   : > { %2032 = vmatprep.mubr.msk.bf16.mxu0 %vm1453_vm0, %v1428_v54 }
 0x280   : > { %2033 = vmatmul.mubr.msk.bf16.vlgmr.msra.gmra.mrb[28].mxu0 %vm1453_vm0, %v1429_v53 }
 0x353   : > { %v2034_v58 = vpop.f32.mrb[28].mxu0 }
 0x354   : > { %v1503_v59 = vadd.f32 %v2034_v58, %v1776_v57  ;;  %v1494_v60 = vpop.f32.mrb[29].mxu0 }
 0x355   : > { %v1495_v61 = vadd.f32 %v1776_v57, %v1494_v60  ;;  %v2035_v62 = vpop.f32.mrb[30].mxu0 }
 0x356   : > { %v1511_v63 = vmax.f32 %v1503_v59, 0.0  ;;  %v1506_v0 = vadd.f32 %v2035_v62, %v1776_v57  ;;  %v1497_v2 = vpop.f32.mrb[31].mxu0 }
 0x357   : > { %v1509_v4 = vmax.f32 %v1495_v61, 0.0  ;;  %v1498_v6 = vadd.f32 %v1776_v57, %v1497_v2 }
 0x358   : > { %v1512_v8 = vmax.f32 %v1506_v0, 0.0  ;;  %v1515_v12 = vmin.f32 %v1511_v63, 1.984375 }
 0x359   : > { %v1510_v10 = vmax.f32 %v1498_v6, 0.0  ;;  %v1513_v16 = vmin.f32 %v1509_v4, 1.984375 }
 0x35a   : > { %v1516_v14 = vmin.f32 %v1512_v8, 1.984375 }
 0x35b   : > { %v1514_v1 = vmin.f32 %v1510_v10, 1.984375 }
 0x35c   : > { %v1518_v18 = vpack.c.bf16 %v1516_v14, %v1515_v12 }
 0x35d   : > { %v1517_v3 = vpack.c.bf16 %v1514_v1, %v1513_v16 }
 0x35f   : > { %2040 = vmatprep.mubr.msk.bf16.mxu1 %vm1453_vm0, %v1517_v3 }
 0x360   : > { %2041 = vmatmul.mubr.msk.bf16.vlgmr.msra.gmra.mrb[28].mxu1 %vm1453_vm0, %v1518_v18 }
 0x433   : > { %v2042_v7 = vpop.f32.mrb[28].mxu1 }
 0x434   : > { %v1582_v9 = vpop.f32.mrb[29].mxu1  ;;  %v1591_v15 = vadd.f32 %v2042_v7, %v1781_v5 }
 0x435   : > { %v1583_v11 = vadd.f32 %v1781_v5, %v1582_v9  ;;  %v2043_v13 = vpop.f32.mrb[30].mxu1 }
 0x436   : > { %v1585_v17 = vpop.f32.mrb[31].mxu1  ;;  %v1594_v20 = vadd.f32 %v2043_v13, %v1781_v5  ;;  %v1788_v23 = vclamps-f32 %v1591_v15, 1.984375 }
 0x437   : > { %v1786_v19 = vclamps-f32 %v1583_v11, 1.984375  ;;  %v1586_v21 = vadd.f32 %v1781_v5, %v1585_v17 }
 0x438   : > { %v1789_v24 = vclamps-f32 %v1594_v20, 1.984375  ;;  %1608 = vst.msk [vmem:[%s439_s26 + $0x10] sm:$0xff] %vm1605_vm1, %v1788_v23 }
 0x439   : > { %1606 = vst.msk [vmem:[%s439_s26] sm:$0xff] %vm1605_vm1, %v1786_v19  ;;  %v1787_v22 = vclamps-f32 %v1586_v21, 1.984375 }
 0x43a   : > { %1609 = vst.msk [vmem:[%s439_s26 + $0x18] sm:$0xff] %vm1605_vm1, %v1789_v24 }
 0x43b   : > { %1607 = vst.msk [vmem:[%s439_s26 + $0x8] sm:$0xff] %vm1605_vm1, %v1787_v22 }
 0x43c PF: > { %s2775_s20 = sld [smem:[#allocation8_spill]]  ;;  %s2776_s17 = smov %s2260_s18 }
 0x43d   : > { %s2777_s18 = smov %s2264_s19  ;;  %s2778_s19 = smov %s2404_s15 }
 0x442   : > { %p22_p9 = scmp.ge.s32.totalorder %s2775_s20, 4  }
 0x444   :  { %24 = sbr.rel (!%p22_p9) target bundleno = 6 (0x6), region = 111 }
 0x44b   :  { %1632 = vsyncpa [#allocation3], 1 }
 0x44c   :  { %1634 = vsyncpa [#allocation3 + $0x1], 1 }
 0x44d   :  { %1635 = vsyncpa [#allocation5], 1 }

</bundles_post_ra>
